<compile_context>
chip_gen: v7x
topology: tpu7x:2x2x1
jax: 0.10.0
libtpu: 0.0.40
codegen_flags: <defaults>
</compile_context>

<pallas_src>
import functools
import numpy as np

import jax
import jax.numpy as jnp
from jax import lax
from jax.experimental import pallas as pl
from jax.experimental.pallas import tpu as pltpu

N_LOC = 2   # localization classes (background / building)
N_CLS = 4   # damage classes (targets 1..4 -> 0..3)


# --------------------------------------------------------------------------
# small helpers for picking TPU-friendly block sizes
# --------------------------------------------------------------------------
def _pick_block(total, cap):
    """Largest block <= cap dividing `total`; prefer multiples of 128."""
    if total <= cap:
        return total
    b = (cap // 128) * 128
    while b >= 128:
        if total % b == 0:
            return b
        b -= 128
    return total  # fallback: whole axis in one block


def _pick_group(total, cap):
    """Largest divisor of `total` that is <= cap."""
    g = min(total, cap)
    while total % g != 0:
        g -= 1
    return g


# --------------------------------------------------------------------------
# Kernel A: 1x1-conv head + per-branch softmax (F.softmax over dim=1)
#           feat laid out (K, M): pixels on lanes -> lane-dense output.
# --------------------------------------------------------------------------
def _head_softmax_kernel(w_ref, b_ref, feat_ref, out_ref, *, n_loc, n_cls):
    ctot = n_loc + n_cls
    k_in = feat_ref.shape[0]
    feat = feat_ref[...]                                        # (K, Mb) f32

    # 6x6 head as broadcast-FMAs on the VPU (MXU would be ~6/256 utilized).
    logit_rows = []
    for c in range(ctot):
        acc = feat[0:1, :] * w_ref[c, 0] + b_ref[c]
        for k in range(1, k_in):
            acc = acc + feat[k:k + 1, :] * w_ref[c, k]
        logit_rows.append(acc)                                  # each (1, Mb)

    def _softmax_rows(rows):
        m = rows[0]
        for r in rows[1:]:
            m = jnp.maximum(m, r)
        exps = [jnp.exp(r - m) for r in rows]
        den = exps[0]
        for e in exps[1:]:
            den = den + e
        inv = pl.reciprocal(den, approx=True)                   # EUP slot, ~free
        return [e * inv for e in exps]

    loc_rows = _softmax_rows(logit_rows[:n_loc])
    cls_rows = _softmax_rows(logit_rows[n_loc:])
    for c, r in enumerate(loc_rows + cls_rows):
        out_ref[c:c + 1, :] = r                                 # lane-dense stores


def head_softmax(feat_t, w_t, b, n_loc, n_cls, cap=2048):
    """feat_t: (K, M); w_t: (Ctot, K); b: (Ctot,).  Returns (Ctot, M) probs."""
    K, M = feat_t.shape
    ctot = n_loc + n_cls
    mb = _pick_block(M, cap)
    kern = functools.partial(_head_softmax_kernel, n_loc=n_loc, n_cls=n_cls)
    return pl.pallas_call(
        kern,
        out_shape=jax.ShapeDtypeStruct((ctot, M), jnp.float32),
        grid=(M // mb,),
        in_specs=[pl.BlockSpec(memory_space=pltpu.MemorySpace.SMEM),   # w_t
                  pl.BlockSpec(memory_space=pltpu.MemorySpace.SMEM),   # b
                  pl.BlockSpec((K, mb), lambda i: (0, i))],
        out_specs=pl.BlockSpec((ctot, mb), lambda i: (0, i)),
        compiler_params=pltpu.CompilerParams(dimension_semantics=("parallel",)),
    )(w_t, b, feat_t)


# --------------------------------------------------------------------------
# Kernel B: bilinear interpolation (align_corners=False) as two matmuls
#           out = A(H,h) @ plane(h,w) @ Bt(w,W), G planes / grid step, H tiled.
# --------------------------------------------------------------------------
def _bilinear_kernel(p_ref, a_ref, bt_ref, o_ref):
    a = a_ref[...].astype(jnp.bfloat16)                         # (Hb, h)
    bt = bt_ref[...].astype(jnp.bfloat16)                       # (w, W)
    for g in range(p_ref.shape[0]):
        # width pass first: lane-dense (h, W) intermediate
        t = jnp.dot(p_ref[g].astype(jnp.bfloat16), bt,
                    preferred_element_type=jnp.float32)         # (h, W)
        o_ref[g] = jnp.dot(a, t.astype(jnp.bfloat16),
                           preferred_element_type=jnp.float32)  # (Hb, W)


def bilinear_upsample(planes, A, Bt):
    NC, h, w = planes.shape
    H = A.shape[0]
    W = Bt.shape[1]
    G = _pick_group(NC, 8)           # planes per grid step (fewer grid steps)
    Hb = _pick_block(H, 256)         # output-row tile keeps intermediates small
    return pl.pallas_call(
        _bilinear_kernel,
        out_shape=jax.ShapeDtypeStruct((NC, H, W), jnp.float32),
        grid=(NC // G, H // Hb),
        in_specs=[pl.BlockSpec((G, h, w), lambda gi, hi: (gi, 0, 0)),
                  pl.BlockSpec((Hb, h), lambda gi, hi: (hi, 0)),
                  pl.BlockSpec((w, W), lambda gi, hi: (0, 0))],
        out_specs=pl.BlockSpec((G, Hb, W), lambda gi, hi: (gi, hi, 0)),
        compiler_params=pltpu.CompilerParams(
            dimension_semantics=("parallel", "parallel")),
    )(planes, A, Bt)


def bilinear_matrix(out_size, in_size):
    """Row-interp matrix matching torch F.interpolate(mode='bilinear', align_corners=False)."""
    scale = in_size / out_size
    i = np.arange(out_size, dtype=np.float64)
    src = np.maximum((i + 0.5) * scale - 0.5, 0.0)
    i0 = np.minimum(np.floor(src).astype(np.int64), in_size - 1)
    i1 = np.minimum(i0 + 1, in_size - 1)
    l1 = src - i0
    l0 = 1.0 - l1
    M = np.zeros((out_size, in_size), dtype=np.float32)
    M[np.arange(out_size), i0] += l0
    M[np.arange(out_size), i1] += l1
    return M


# --------------------------------------------------------------------------
# Kernel C: elementwise target remapping (255->-1; loc/cls target derivation)
# --------------------------------------------------------------------------
def _remap_kernel(t_ref, loc_ref, cls_ref):
    t = t_ref[...]
    t = jnp.where(t == 255, -1, t)
    loc_t = jnp.where(t > 0, 1, t)
    loc_t = jnp.where(loc_t < 0, 255, loc_t)
    cls_t = t - 1
    cls_t = jnp.where(cls_t < 0, 255, cls_t)
    loc_ref[...] = loc_t
    cls_ref[...] = cls_t


def remap_targets(targets):
    N, H, W = targets.shape
    R = N * H
    t2 = targets.reshape(R, W)
    rb = _pick_block(R, 1024)
    loc_t, cls_t = pl.pallas_call(
        _remap_kernel,
        out_shape=(jax.ShapeDtypeStruct((R, W), jnp.int32),
                   jax.ShapeDtypeStruct((R, W), jnp.int32)),
        grid=(R // rb,),
        in_specs=[pl.BlockSpec((rb, W), lambda i: (i, 0))],
        out_specs=(pl.BlockSpec((rb, W), lambda i: (i, 0)),
                   pl.BlockSpec((rb, W), lambda i: (i, 0))),
        compiler_params=pltpu.CompilerParams(dimension_semantics=("parallel",)),
    )(t2)
    return loc_t.reshape(N, H, W), cls_t.reshape(N, H, W)


# --------------------------------------------------------------------------
# Kernel D: lovasz_softmax_flat core on presorted errors, blocked over P.
#           Single per-block (Pb,Pb) triangular matmul gives the inclusive
#           cumsum; everything else is derived algebraically:
#             cs_fg_p  = cs_fg - fg
#             cs_nfg   = (pos+1) - cs_fg
#             cs_nfg_p = pos     - cs_fg_p
#           A (C,1) carry + (C,1) loss accumulator persist in VMEM scratch.
# --------------------------------------------------------------------------
def _lovasz_flat_kernel(gts_ref, err_ref, fg_ref, loss_ref,
                        carry_sc, loss_sc, *, pb):
    b = pl.program_id(0)
    nb = pl.num_programs(0)

    @pl.when(b == 0)
    def _():
        carry_sc[...] = jnp.zeros_like(carry_sc)
        loss_sc[...] = jnp.zeros_like(loss_sc)

    fg = fg_ref[...]                                            # (C, Pb) in {0,1}
    err = err_ref[...]
    gts = gts_ref[...]                                          # (C, 1)

    # within-block inclusive cumsum along lanes via upper-triangular matmul.
    # bf16 operands are exact for 0/1 values; MXU accumulates in f32 (counts <= 2^24).
    row = lax.broadcasted_iota(jnp.int32, (pb, pb), 0)
    col = lax.broadcasted_iota(jnp.int32, (pb, pb), 1)
    tri = (row <= col).astype(jnp.bfloat16)
    cs_local = jnp.dot(fg.astype(jnp.bfloat16), tri,
                       preferred_element_type=jnp.float32)      # (C, Pb)
    carry = carry_sc[...]                                       # prefix from prior blocks
    cs_fg = cs_local + carry
    carry_sc[...] = carry + jnp.sum(fg, axis=-1, keepdims=True)

    # global 0-based position of each sorted pixel
    jpos = (b * pb + lax.broadcasted_iota(jnp.int32, fg.shape, 1)).astype(jnp.float32)

    inter = gts - cs_fg
    union = gts + (jpos + 1.0) - cs_fg          # >= max(gts, j+1) >= 1 -> safe divide
    jac = 1.0 - inter / union

    cs_fg_p = cs_fg - fg                        # exclusive cumsum
    inter_p = gts - cs_fg_p
    union_p = gts + jpos - cs_fg_p              # >= 1 for j >= 1
    is0 = jpos == 0.0                           # lovasz_grad special-cases element 0
    jac_p = jnp.where(is0, 0.0, 1.0 - inter_p / jnp.where(is0, 1.0, union_p))

    grad = jac - jac_p
    loss_sc[...] += jnp.sum(err * grad, axis=-1, keepdims=True)

    @pl.when(b == nb - 1)
    def _():
        loss_ref[...] = loss_sc[...]


def lovasz_flat(errors_sorted, fg_sorted, gts):
    C, P = errors_sorted.shape
    pb = _pick_block(P, 512)
    nb = P // pb
    kern = functools.partial(_lovasz_flat_kernel, pb=pb)
    loss = pl.pallas_call(
        kern,
        out_shape=jax.ShapeDtypeStruct((C, 1), jnp.float32),
        grid=(nb,),
        in_specs=[pl.BlockSpec((C, 1), lambda b: (0, 0)),
                  pl.BlockSpec((C, pb), lambda b: (0, b)),
                  pl.BlockSpec((C, pb), lambda b: (0, b))],
        out_specs=pl.BlockSpec((C, 1), lambda b: (0, 0)),
        scratch_shapes=[pltpu.VMEM((C, 1), jnp.float32),   # running cumsum carry
                        pltpu.VMEM((C, 1), jnp.float32)],  # loss accumulator
        compiler_params=pltpu.CompilerParams(dimension_semantics=("arbitrary",)),
    )(gts, errors_sorted, fg_sorted)
    return loss[:, 0]


def lovasz_softmax(probas_nchw, labels, ignore=255, weights=None):
    """classes='present', per_image=False semantics of the original lovasz_softmax.

    Ignored pixels are zero-masked (err=0, fg=0) rather than filtered; they sort
    to the tail with zero error so err*grad contributions are identical to the
    filtered version, and gts / 'present' are unaffected.
    """
    N, C, H, W = probas_nchw.shape
    probs_flat = jnp.transpose(probas_nchw, (0, 2, 3, 1)).reshape(-1, C)   # (P, C)
    labels_flat = labels.reshape(-1)
    validf = (labels_flat != ignore).astype(jnp.float32)

    classes = jnp.arange(C, dtype=labels_flat.dtype)
    fg = (labels_flat[None, :] == classes[:, None]).astype(jnp.float32)    # (C, P)
    errors = jnp.abs(fg - probs_flat.T) * validf[None, :]                  # (C, P)

    # per-class foreground count is permutation-invariant -> compute pre-sort (tiny glue reduce)
    gts = jnp.sum(fg, axis=-1, keepdims=True)                              # (C, 1)

    # TODO(synk): descending sort (torch.sort) has no Pallas TPU primitive; done in JAX glue.
    order = jnp.argsort(-errors, axis=-1)
    errors_sorted = jnp.take_along_axis(errors, order, axis=-1)
    fg_sorted = jnp.take_along_axis(fg, order, axis=-1)

    per_class_loss = lovasz_flat(errors_sorted, fg_sorted, gts)            # (C,)
    present = gts[:, 0] > 0                                                # classes='present'
    if weights is not None:
        per_class_loss = per_class_loss * jnp.asarray(weights, jnp.float32)
    n_present = jnp.sum(present.astype(jnp.float32))
    total = jnp.sum(jnp.where(present, per_class_loss, 0.0))
    return jnp.where(n_present > 0, total / jnp.maximum(n_present, 1.0), 0.0)


# --------------------------------------------------------------------------
# ModelLossWraper.forward (is_split_loss=True path)
# --------------------------------------------------------------------------
def model_loss_wrapper_forward(inputs_pre, inputs_post, targets, params, class_weights):
    N, Cin, H, W = inputs_pre.shape
    Ht, Wt = targets.shape[1], targets.shape[2]
    stride = 4
    h, w = H // stride, W // stride
    ctot = N_LOC + N_CLS

    # synthetic backbone glue: 4x4 avg-pool, channel concat, (K, M) layout
    def pool_nhwc(x):
        x = jnp.transpose(x, (0, 2, 3, 1))                      # NCHW -> NHWC
        return x.reshape(N, h, stride, w, stride, Cin).mean(axis=(2, 4))

    feat = jnp.concatenate([pool_nhwc(inputs_pre), pool_nhwc(inputs_post)], axis=-1)
    feat_t = feat.reshape(N * h * w, 2 * Cin).T                 # (K, M), pixels on lanes

    # head + softmax (Pallas, lane-dense (Ctot, M) output)
    probs = head_softmax(feat_t, params["w"].T, params["b"].reshape(-1), N_LOC, N_CLS)
    probs_nchw = jnp.transpose(probs.reshape(ctot, N, h, w), (1, 0, 2, 3))  # (N, Ctot, h, w)

    # bilinear upsample to target size (Pallas)
    planes = probs_nchw.reshape(N * ctot, h, w)
    A = jnp.asarray(bilinear_matrix(Ht, h))
    Bt = jnp.asarray(bilinear_matrix(Wt, w).T)
    up = bilinear_upsample(planes, A, Bt).reshape(N, ctot, Ht, Wt)
    loc_up = up[:, :N_LOC]
    cls_up = up[:, N_LOC:]

    # target remapping (Pallas)
    loc_t, cls_t = remap_targets(targets)

    loc_loss = lovasz_softmax(loc_up, loc_t, ignore=255, weights=None)
    cls_loss = lovasz_softmax(cls_up, cls_t, ignore=255, weights=class_weights)
    return loc_loss + cls_loss


if __name__ == "__main__":
    key = jax.random.PRNGKey(0)
    k1, k2, k3, k4, k5 = jax.random.split(key, 5)

    N, Cin, H, W = 2, 3, 16, 16
    inputs_pre = jax.random.normal(k1, (N, Cin, H, W), jnp.float32)
    inputs_post = jax.random.normal(k2, (N, Cin, H, W), jnp.float32)
    raw = jax.random.randint(k3, (N, H, W), 0, 6)
    targets = jnp.where(raw == 5, 255, raw).astype(jnp.int32)   # labels 0..4 plus 255 ignore

    params = {
        "w": (jax.random.normal(k4, (2 * Cin, N_LOC + N_CLS), jnp.float32) * 0.5),
        "b": (jax.random.normal(k5, (1, N_LOC + N_CLS), jnp.float32) * 0.1),
    }
    class_weights = [1.0, 1.5, 2.0, 2.5]

    loss = model_loss_wrapper_forward(inputs_pre, inputs_post, targets, params, class_weights)
    loss = jax.block_until_ready(loss)
    assert jnp.isfinite(loss)
    print("KERNEL_OK")
</pallas_src>

<mosaic_0001>
module attributes {stable_mosaic.version = 11 : i64} {
  func.func @_head_softmax_kernel(%arg0: i32, %arg1: memref<6x6xf32, #tpu.memory_space<smem>>, %arg2: memref<6xf32, #tpu.memory_space<smem>>, %arg3: memref<6x32xf32, #tpu.memory_space<vmem>>, %arg4: memref<6x32xf32, #tpu.memory_space<vmem>>) attributes {dimension_semantics = [#tpu.dimension_semantics<parallel>], iteration_bounds = array<i64: 1>, scalar_prefetch = 0 : i64, scratch_operands = 0 : i64, tpu.core_type = #tpu.core_type<tc>, window_params = [{transform_indices = @transform_0, window_bounds = array<i64: 6, 6>}, {transform_indices = @transform_1, window_bounds = array<i64: 6>}, {transform_indices = @transform_2, window_bounds = array<i64: 6, 32>}, {transform_indices = @transform_3, window_bounds = array<i64: 6, 32>}]} {
    %c0 = arith.constant 0 : index
    %c0_0 = arith.constant 0 : index
    %0 = vector.load %arg3[%c0, %c0_0] : memref<6x32xf32, #tpu.memory_space<vmem>>, vector<6x32xf32>
    %1 = vector.extract_strided_slice %0 {offsets = [0, 0], sizes = [1, 32], strides = [1, 1]} : vector<6x32xf32> to vector<1x32xf32>
    %c0_1 = arith.constant 0 : index
    %c0_2 = arith.constant 0 : index
    %2 = memref.load %arg1[%c0_1, %c0_2] : memref<6x6xf32, #tpu.memory_space<smem>>
    %3 = vector.broadcast %2 : f32 to vector<1x32xf32>
    %4 = arith.mulf %1, %3 : vector<1x32xf32>
    %c0_3 = arith.constant 0 : index
    %5 = memref.load %arg2[%c0_3] : memref<6xf32, #tpu.memory_space<smem>>
    %6 = vector.broadcast %5 : f32 to vector<1x32xf32>
    %7 = arith.addf %4, %6 : vector<1x32xf32>
    %8 = vector.extract_strided_slice %0 {offsets = [1, 0], sizes = [1, 32], strides = [1, 1]} : vector<6x32xf32> to vector<1x32xf32>
    %c0_4 = arith.constant 0 : index
    %c1 = arith.constant 1 : index
    %9 = memref.load %arg1[%c0_4, %c1] : memref<6x6xf32, #tpu.memory_space<smem>>
    %10 = vector.broadcast %9 : f32 to vector<1x32xf32>
    %11 = arith.mulf %8, %10 : vector<1x32xf32>
    %12 = arith.addf %7, %11 : vector<1x32xf32>
    %13 = vector.extract_strided_slice %0 {offsets = [2, 0], sizes = [1, 32], strides = [1, 1]} : vector<6x32xf32> to vector<1x32xf32>
    %c0_5 = arith.constant 0 : index
    %c2 = arith.constant 2 : index
    %14 = memref.load %arg1[%c0_5, %c2] : memref<6x6xf32, #tpu.memory_space<smem>>
    %15 = vector.broadcast %14 : f32 to vector<1x32xf32>
    %16 = arith.mulf %13, %15 : vector<1x32xf32>
    %17 = arith.addf %12, %16 : vector<1x32xf32>
    %18 = vector.extract_strided_slice %0 {offsets = [3, 0], sizes = [1, 32], strides = [1, 1]} : vector<6x32xf32> to vector<1x32xf32>
    %c0_6 = arith.constant 0 : index
    %c3 = arith.constant 3 : index
    %19 = memref.load %arg1[%c0_6, %c3] : memref<6x6xf32, #tpu.memory_space<smem>>
    %20 = vector.broadcast %19 : f32 to vector<1x32xf32>
    %21 = arith.mulf %18, %20 : vector<1x32xf32>
    %22 = arith.addf %17, %21 : vector<1x32xf32>
    %23 = vector.extract_strided_slice %0 {offsets = [4, 0], sizes = [1, 32], strides = [1, 1]} : vector<6x32xf32> to vector<1x32xf32>
    %c0_7 = arith.constant 0 : index
    %c4 = arith.constant 4 : index
    %24 = memref.load %arg1[%c0_7, %c4] : memref<6x6xf32, #tpu.memory_space<smem>>
    %25 = vector.broadcast %24 : f32 to vector<1x32xf32>
    %26 = arith.mulf %23, %25 : vector<1x32xf32>
    %27 = arith.addf %22, %26 : vector<1x32xf32>
    %28 = vector.extract_strided_slice %0 {offsets = [5, 0], sizes = [1, 32], strides = [1, 1]} : vector<6x32xf32> to vector<1x32xf32>
    %c0_8 = arith.constant 0 : index
    %c5 = arith.constant 5 : index
    %29 = memref.load %arg1[%c0_8, %c5] : memref<6x6xf32, #tpu.memory_space<smem>>
    %30 = vector.broadcast %29 : f32 to vector<1x32xf32>
    %31 = arith.mulf %28, %30 : vector<1x32xf32>
    %32 = arith.addf %27, %31 : vector<1x32xf32>
    %33 = vector.extract_strided_slice %0 {offsets = [0, 0], sizes = [1, 32], strides = [1, 1]} : vector<6x32xf32> to vector<1x32xf32>
    %c1_9 = arith.constant 1 : index
    %c0_10 = arith.constant 0 : index
    %34 = memref.load %arg1[%c1_9, %c0_10] : memref<6x6xf32, #tpu.memory_space<smem>>
    %35 = vector.broadcast %34 : f32 to vector<1x32xf32>
    %36 = arith.mulf %33, %35 : vector<1x32xf32>
    %c1_11 = arith.constant 1 : index
    %37 = memref.load %arg2[%c1_11] : memref<6xf32, #tpu.memory_space<smem>>
    %38 = vector.broadcast %37 : f32 to vector<1x32xf32>
    %39 = arith.addf %36, %38 : vector<1x32xf32>
    %40 = vector.extract_strided_slice %0 {offsets = [1, 0], sizes = [1, 32], strides = [1, 1]} : vector<6x32xf32> to vector<1x32xf32>
    %c1_12 = arith.constant 1 : index
    %c1_13 = arith.constant 1 : index
    %41 = memref.load %arg1[%c1_12, %c1_13] : memref<6x6xf32, #tpu.memory_space<smem>>
    %42 = vector.broadcast %41 : f32 to vector<1x32xf32>
    %43 = arith.mulf %40, %42 : vector<1x32xf32>
    %44 = arith.addf %39, %43 : vector<1x32xf32>
    %45 = vector.extract_strided_slice %0 {offsets = [2, 0], sizes = [1, 32], strides = [1, 1]} : vector<6x32xf32> to vector<1x32xf32>
    %c1_14 = arith.constant 1 : index
    %c2_15 = arith.constant 2 : index
    %46 = memref.load %arg1[%c1_14, %c2_15] : memref<6x6xf32, #tpu.memory_space<smem>>
    %47 = vector.broadcast %46 : f32 to vector<1x32xf32>
    %48 = arith.mulf %45, %47 : vector<1x32xf32>
    %49 = arith.addf %44, %48 : vector<1x32xf32>
    %50 = vector.extract_strided_slice %0 {offsets = [3, 0], sizes = [1, 32], strides = [1, 1]} : vector<6x32xf32> to vector<1x32xf32>
    %c1_16 = arith.constant 1 : index
    %c3_17 = arith.constant 3 : index
    %51 = memref.load %arg1[%c1_16, %c3_17] : memref<6x6xf32, #tpu.memory_space<smem>>
    %52 = vector.broadcast %51 : f32 to vector<1x32xf32>
    %53 = arith.mulf %50, %52 : vector<1x32xf32>
    %54 = arith.addf %49, %53 : vector<1x32xf32>
    %55 = vector.extract_strided_slice %0 {offsets = [4, 0], sizes = [1, 32], strides = [1, 1]} : vector<6x32xf32> to vector<1x32xf32>
    %c1_18 = arith.constant 1 : index
    %c4_19 = arith.constant 4 : index
    %56 = memref.load %arg1[%c1_18, %c4_19] : memref<6x6xf32, #tpu.memory_space<smem>>
    %57 = vector.broadcast %56 : f32 to vector<1x32xf32>
    %58 = arith.mulf %55, %57 : vector<1x32xf32>
    %59 = arith.addf %54, %58 : vector<1x32xf32>
    %60 = vector.extract_strided_slice %0 {offsets = [5, 0], sizes = [1, 32], strides = [1, 1]} : vector<6x32xf32> to vector<1x32xf32>
    %c1_20 = arith.constant 1 : index
    %c5_21 = arith.constant 5 : index
    %61 = memref.load %arg1[%c1_20, %c5_21] : memref<6x6xf32, #tpu.memory_space<smem>>
    %62 = vector.broadcast %61 : f32 to vector<1x32xf32>
    %63 = arith.mulf %60, %62 : vector<1x32xf32>
    %64 = arith.addf %59, %63 : vector<1x32xf32>
    %65 = vector.extract_strided_slice %0 {offsets = [0, 0], sizes = [1, 32], strides = [1, 1]} : vector<6x32xf32> to vector<1x32xf32>
    %c2_22 = arith.constant 2 : index
    %c0_23 = arith.constant 0 : index
    %66 = memref.load %arg1[%c2_22, %c0_23] : memref<6x6xf32, #tpu.memory_space<smem>>
    %67 = vector.broadcast %66 : f32 to vector<1x32xf32>
    %68 = arith.mulf %65, %67 : vector<1x32xf32>
    %c2_24 = arith.constant 2 : index
    %69 = memref.load %arg2[%c2_24] : memref<6xf32, #tpu.memory_space<smem>>
    %70 = vector.broadcast %69 : f32 to vector<1x32xf32>
    %71 = arith.addf %68, %70 : vector<1x32xf32>
    %72 = vector.extract_strided_slice %0 {offsets = [1, 0], sizes = [1, 32], strides = [1, 1]} : vector<6x32xf32> to vector<1x32xf32>
    %c2_25 = arith.constant 2 : index
    %c1_26 = arith.constant 1 : index
    %73 = memref.load %arg1[%c2_25, %c1_26] : memref<6x6xf32, #tpu.memory_space<smem>>
    %74 = vector.broadcast %73 : f32 to vector<1x32xf32>
    %75 = arith.mulf %72, %74 : vector<1x32xf32>
    %76 = arith.addf %71, %75 : vector<1x32xf32>
    %77 = vector.extract_strided_slice %0 {offsets = [2, 0], sizes = [1, 32], strides = [1, 1]} : vector<6x32xf32> to vector<1x32xf32>
    %c2_27 = arith.constant 2 : index
    %c2_28 = arith.constant 2 : index
    %78 = memref.load %arg1[%c2_27, %c2_28] : memref<6x6xf32, #tpu.memory_space<smem>>
    %79 = vector.broadcast %78 : f32 to vector<1x32xf32>
    %80 = arith.mulf %77, %79 : vector<1x32xf32>
    %81 = arith.addf %76, %80 : vector<1x32xf32>
    %82 = vector.extract_strided_slice %0 {offsets = [3, 0], sizes = [1, 32], strides = [1, 1]} : vector<6x32xf32> to vector<1x32xf32>
    %c2_29 = arith.constant 2 : index
    %c3_30 = arith.constant 3 : index
    %83 = memref.load %arg1[%c2_29, %c3_30] : memref<6x6xf32, #tpu.memory_space<smem>>
    %84 = vector.broadcast %83 : f32 to vector<1x32xf32>
    %85 = arith.mulf %82, %84 : vector<1x32xf32>
    %86 = arith.addf %81, %85 : vector<1x32xf32>
    %87 = vector.extract_strided_slice %0 {offsets = [4, 0], sizes = [1, 32], strides = [1, 1]} : vector<6x32xf32> to vector<1x32xf32>
    %c2_31 = arith.constant 2 : index
    %c4_32 = arith.constant 4 : index
    %88 = memref.load %arg1[%c2_31, %c4_32] : memref<6x6xf32, #tpu.memory_space<smem>>
    %89 = vector.broadcast %88 : f32 to vector<1x32xf32>
    %90 = arith.mulf %87, %89 : vector<1x32xf32>
    %91 = arith.addf %86, %90 : vector<1x32xf32>
    %92 = vector.extract_strided_slice %0 {offsets = [5, 0], sizes = [1, 32], strides = [1, 1]} : vector<6x32xf32> to vector<1x32xf32>
    %c2_33 = arith.constant 2 : index
    %c5_34 = arith.constant 5 : index
    %93 = memref.load %arg1[%c2_33, %c5_34] : memref<6x6xf32, #tpu.memory_space<smem>>
    %94 = vector.broadcast %93 : f32 to vector<1x32xf32>
    %95 = arith.mulf %92, %94 : vector<1x32xf32>
    %96 = arith.addf %91, %95 : vector<1x32xf32>
    %97 = vector.extract_strided_slice %0 {offsets = [0, 0], sizes = [1, 32], strides = [1, 1]} : vector<6x32xf32> to vector<1x32xf32>
    %c3_35 = arith.constant 3 : index
    %c0_36 = arith.constant 0 : index
    %98 = memref.load %arg1[%c3_35, %c0_36] : memref<6x6xf32, #tpu.memory_space<smem>>
    %99 = vector.broadcast %98 : f32 to vector<1x32xf32>
    %100 = arith.mulf %97, %99 : vector<1x32xf32>
    %c3_37 = arith.constant 3 : index
    %101 = memref.load %arg2[%c3_37] : memref<6xf32, #tpu.memory_space<smem>>
    %102 = vector.broadcast %101 : f32 to vector<1x32xf32>
    %103 = arith.addf %100, %102 : vector<1x32xf32>
    %104 = vector.extract_strided_slice %0 {offsets = [1, 0], sizes = [1, 32], strides = [1, 1]} : vector<6x32xf32> to vector<1x32xf32>
    %c3_38 = arith.constant 3 : index
    %c1_39 = arith.constant 1 : index
    %105 = memref.load %arg1[%c3_38, %c1_39] : memref<6x6xf32, #tpu.memory_space<smem>>
    %106 = vector.broadcast %105 : f32 to vector<1x32xf32>
    %107 = arith.mulf %104, %106 : vector<1x32xf32>
    %108 = arith.addf %103, %107 : vector<1x32xf32>
    %109 = vector.extract_strided_slice %0 {offsets = [2, 0], sizes = [1, 32], strides = [1, 1]} : vector<6x32xf32> to vector<1x32xf32>
    %c3_40 = arith.constant 3 : index
    %c2_41 = arith.constant 2 : index
    %110 = memref.load %arg1[%c3_40, %c2_41] : memref<6x6xf32, #tpu.memory_space<smem>>
    %111 = vector.broadcast %110 : f32 to vector<1x32xf32>
    %112 = arith.mulf %109, %111 : vector<1x32xf32>
    %113 = arith.addf %108, %112 : vector<1x32xf32>
    %114 = vector.extract_strided_slice %0 {offsets = [3, 0], sizes = [1, 32], strides = [1, 1]} : vector<6x32xf32> to vector<1x32xf32>
    %c3_42 = arith.constant 3 : index
    %c3_43 = arith.constant 3 : index
    %115 = memref.load %arg1[%c3_42, %c3_43] : memref<6x6xf32, #tpu.memory_space<smem>>
    %116 = vector.broadcast %115 : f32 to vector<1x32xf32>
    %117 = arith.mulf %114, %116 : vector<1x32xf32>
    %118 = arith.addf %113, %117 : vector<1x32xf32>
    %119 = vector.extract_strided_slice %0 {offsets = [4, 0], sizes = [1, 32], strides = [1, 1]} : vector<6x32xf32> to vector<1x32xf32>
    %c3_44 = arith.constant 3 : index
    %c4_45 = arith.constant 4 : index
    %120 = memref.load %arg1[%c3_44, %c4_45] : memref<6x6xf32, #tpu.memory_space<smem>>
    %121 = vector.broadcast %120 : f32 to vector<1x32xf32>
    %122 = arith.mulf %119, %121 : vector<1x32xf32>
    %123 = arith.addf %118, %122 : vector<1x32xf32>
    %124 = vector.extract_strided_slice %0 {offsets = [5, 0], sizes = [1, 32], strides = [1, 1]} : vector<6x32xf32> to vector<1x32xf32>
    %c3_46 = arith.constant 3 : index
    %c5_47 = arith.constant 5 : index
    %125 = memref.load %arg1[%c3_46, %c5_47] : memref<6x6xf32, #tpu.memory_space<smem>>
    %126 = vector.broadcast %125 : f32 to vector<1x32xf32>
    %127 = arith.mulf %124, %126 : vector<1x32xf32>
    %128 = arith.addf %123, %127 : vector<1x32xf32>
    %129 = vector.extract_strided_slice %0 {offsets = [0, 0], sizes = [1, 32], strides = [1, 1]} : vector<6x32xf32> to vector<1x32xf32>
    %c4_48 = arith.constant 4 : index
    %c0_49 = arith.constant 0 : index
    %130 = memref.load %arg1[%c4_48, %c0_49] : memref<6x6xf32, #tpu.memory_space<smem>>
    %131 = vector.broadcast %130 : f32 to vector<1x32xf32>
    %132 = arith.mulf %129, %131 : vector<1x32xf32>
    %c4_50 = arith.constant 4 : index
    %133 = memref.load %arg2[%c4_50] : memref<6xf32, #tpu.memory_space<smem>>
    %134 = vector.broadcast %133 : f32 to vector<1x32xf32>
    %135 = arith.addf %132, %134 : vector<1x32xf32>
    %136 = vector.extract_strided_slice %0 {offsets = [1, 0], sizes = [1, 32], strides = [1, 1]} : vector<6x32xf32> to vector<1x32xf32>
    %c4_51 = arith.constant 4 : index
    %c1_52 = arith.constant 1 : index
    %137 = memref.load %arg1[%c4_51, %c1_52] : memref<6x6xf32, #tpu.memory_space<smem>>
    %138 = vector.broadcast %137 : f32 to vector<1x32xf32>
    %139 = arith.mulf %136, %138 : vector<1x32xf32>
    %140 = arith.addf %135, %139 : vector<1x32xf32>
    %141 = vector.extract_strided_slice %0 {offsets = [2, 0], sizes = [1, 32], strides = [1, 1]} : vector<6x32xf32> to vector<1x32xf32>
    %c4_53 = arith.constant 4 : index
    %c2_54 = arith.constant 2 : index
    %142 = memref.load %arg1[%c4_53, %c2_54] : memref<6x6xf32, #tpu.memory_space<smem>>
    %143 = vector.broadcast %142 : f32 to vector<1x32xf32>
    %144 = arith.mulf %141, %143 : vector<1x32xf32>
    %145 = arith.addf %140, %144 : vector<1x32xf32>
    %146 = vector.extract_strided_slice %0 {offsets = [3, 0], sizes = [1, 32], strides = [1, 1]} : vector<6x32xf32> to vector<1x32xf32>
    %c4_55 = arith.constant 4 : index
    %c3_56 = arith.constant 3 : index
    %147 = memref.load %arg1[%c4_55, %c3_56] : memref<6x6xf32, #tpu.memory_space<smem>>
    %148 = vector.broadcast %147 : f32 to vector<1x32xf32>
    %149 = arith.mulf %146, %148 : vector<1x32xf32>
    %150 = arith.addf %145, %149 : vector<1x32xf32>
    %151 = vector.extract_strided_slice %0 {offsets = [4, 0], sizes = [1, 32], strides = [1, 1]} : vector<6x32xf32> to vector<1x32xf32>
    %c4_57 = arith.constant 4 : index
    %c4_58 = arith.constant 4 : index
    %152 = memref.load %arg1[%c4_57, %c4_58] : memref<6x6xf32, #tpu.memory_space<smem>>
    %153 = vector.broadcast %152 : f32 to vector<1x32xf32>
    %154 = arith.mulf %151, %153 : vector<1x32xf32>
    %155 = arith.addf %150, %154 : vector<1x32xf32>
    %156 = vector.extract_strided_slice %0 {offsets = [5, 0], sizes = [1, 32], strides = [1, 1]} : vector<6x32xf32> to vector<1x32xf32>
    %c4_59 = arith.constant 4 : index
    %c5_60 = arith.constant 5 : index
    %157 = memref.load %arg1[%c4_59, %c5_60] : memref<6x6xf32, #tpu.memory_space<smem>>
    %158 = vector.broadcast %157 : f32 to vector<1x32xf32>
    %159 = arith.mulf %156, %158 : vector<1x32xf32>
    %160 = arith.addf %155, %159 : vector<1x32xf32>
    %161 = vector.extract_strided_slice %0 {offsets = [0, 0], sizes = [1, 32], strides = [1, 1]} : vector<6x32xf32> to vector<1x32xf32>
    %c5_61 = arith.constant 5 : index
    %c0_62 = arith.constant 0 : index
    %162 = memref.load %arg1[%c5_61, %c0_62] : memref<6x6xf32, #tpu.memory_space<smem>>
    %163 = vector.broadcast %162 : f32 to vector<1x32xf32>
    %164 = arith.mulf %161, %163 : vector<1x32xf32>
    %c5_63 = arith.constant 5 : index
    %165 = memref.load %arg2[%c5_63] : memref<6xf32, #tpu.memory_space<smem>>
    %166 = vector.broadcast %165 : f32 to vector<1x32xf32>
    %167 = arith.addf %164, %166 : vector<1x32xf32>
    %168 = vector.extract_strided_slice %0 {offsets = [1, 0], sizes = [1, 32], strides = [1, 1]} : vector<6x32xf32> to vector<1x32xf32>
    %c5_64 = arith.constant 5 : index
    %c1_65 = arith.constant 1 : index
    %169 = memref.load %arg1[%c5_64, %c1_65] : memref<6x6xf32, #tpu.memory_space<smem>>
    %170 = vector.broadcast %169 : f32 to vector<1x32xf32>
    %171 = arith.mulf %168, %170 : vector<1x32xf32>
    %172 = arith.addf %167, %171 : vector<1x32xf32>
    %173 = vector.extract_strided_slice %0 {offsets = [2, 0], sizes = [1, 32], strides = [1, 1]} : vector<6x32xf32> to vector<1x32xf32>
    %c5_66 = arith.constant 5 : index
    %c2_67 = arith.constant 2 : index
    %174 = memref.load %arg1[%c5_66, %c2_67] : memref<6x6xf32, #tpu.memory_space<smem>>
    %175 = vector.broadcast %174 : f32 to vector<1x32xf32>
    %176 = arith.mulf %173, %175 : vector<1x32xf32>
    %177 = arith.addf %172, %176 : vector<1x32xf32>
    %178 = vector.extract_strided_slice %0 {offsets = [3, 0], sizes = [1, 32], strides = [1, 1]} : vector<6x32xf32> to vector<1x32xf32>
    %c5_68 = arith.constant 5 : index
    %c3_69 = arith.constant 3 : index
    %179 = memref.load %arg1[%c5_68, %c3_69] : memref<6x6xf32, #tpu.memory_space<smem>>
    %180 = vector.broadcast %179 : f32 to vector<1x32xf32>
    %181 = arith.mulf %178, %180 : vector<1x32xf32>
    %182 = arith.addf %177, %181 : vector<1x32xf32>
    %183 = vector.extract_strided_slice %0 {offsets = [4, 0], sizes = [1, 32], strides = [1, 1]} : vector<6x32xf32> to vector<1x32xf32>
    %c5_70 = arith.constant 5 : index
    %c4_71 = arith.constant 4 : index
    %184 = memref.load %arg1[%c5_70, %c4_71] : memref<6x6xf32, #tpu.memory_space<smem>>
    %185 = vector.broadcast %184 : f32 to vector<1x32xf32>
    %186 = arith.mulf %183, %185 : vector<1x32xf32>
    %187 = arith.addf %182, %186 : vector<1x32xf32>
    %188 = vector.extract_strided_slice %0 {offsets = [5, 0], sizes = [1, 32], strides = [1, 1]} : vector<6x32xf32> to vector<1x32xf32>
    %c5_72 = arith.constant 5 : index
    %c5_73 = arith.constant 5 : index
    %189 = memref.load %arg1[%c5_72, %c5_73] : memref<6x6xf32, #tpu.memory_space<smem>>
    %190 = vector.broadcast %189 : f32 to vector<1x32xf32>
    %191 = arith.mulf %188, %190 : vector<1x32xf32>
    %192 = arith.addf %187, %191 : vector<1x32xf32>
    %193 = arith.maximumf %32, %64 : vector<1x32xf32>
    %194 = arith.subf %32, %193 : vector<1x32xf32>
    %195 = math.exp %194 : vector<1x32xf32>
    %196 = arith.subf %64, %193 : vector<1x32xf32>
    %197 = math.exp %196 : vector<1x32xf32>
    %198 = arith.addf %195, %197 : vector<1x32xf32>
    %199 = tpu.reciprocal %198 {approx = true} : vector<1x32xf32> -> vector<1x32xf32>
    %200 = arith.mulf %195, %199 : vector<1x32xf32>
    %201 = arith.mulf %197, %199 : vector<1x32xf32>
    %202 = arith.maximumf %96, %128 : vector<1x32xf32>
    %203 = arith.maximumf %202, %160 : vector<1x32xf32>
    %204 = arith.maximumf %203, %192 : vector<1x32xf32>
    %205 = arith.subf %96, %204 : vector<1x32xf32>
    %206 = math.exp %205 : vector<1x32xf32>
    %207 = arith.subf %128, %204 : vector<1x32xf32>
    %208 = math.exp %207 : vector<1x32xf32>
    %209 = arith.subf %160, %204 : vector<1x32xf32>
    %210 = math.exp %209 : vector<1x32xf32>
    %211 = arith.subf %192, %204 : vector<1x32xf32>
    %212 = math.exp %211 : vector<1x32xf32>
    %213 = arith.addf %206, %208 : vector<1x32xf32>
    %214 = arith.addf %213, %210 : vector<1x32xf32>
    %215 = arith.addf %214, %212 : vector<1x32xf32>
    %216 = tpu.reciprocal %215 {approx = true} : vector<1x32xf32> -> vector<1x32xf32>
    %217 = arith.mulf %206, %216 : vector<1x32xf32>
    %218 = arith.mulf %208, %216 : vector<1x32xf32>
    %219 = arith.mulf %210, %216 : vector<1x32xf32>
    %220 = arith.mulf %212, %216 : vector<1x32xf32>
    %c0_74 = arith.constant 0 : index
    %c0_75 = arith.constant 0 : index
    %221 = vector.load %arg4[%c0_74, %c0_75] : memref<6x32xf32, #tpu.memory_space<vmem>>, vector<1x32xf32>
    tpu.vector_store %arg4[%c0_74, %c0_75], %200 {strides = array<i32>} : memref<6x32xf32, #tpu.memory_space<vmem>>, vector<1x32xf32>,
    %c1_76 = arith.constant 1 : index
    %c0_77 = arith.constant 0 : index
    %222 = vector.load %arg4[%c1_76, %c0_77] : memref<6x32xf32, #tpu.memory_space<vmem>>, vector<1x32xf32>
    tpu.vector_store %arg4[%c1_76, %c0_77], %201 {strides = array<i32>} : memref<6x32xf32, #tpu.memory_space<vmem>>, vector<1x32xf32>,
    %c2_78 = arith.constant 2 : index
    %c0_79 = arith.constant 0 : index
    %223 = vector.load %arg4[%c2_78, %c0_79] : memref<6x32xf32, #tpu.memory_space<vmem>>, vector<1x32xf32>
    tpu.vector_store %arg4[%c2_78, %c0_79], %217 {strides = array<i32>} : memref<6x32xf32, #tpu.memory_space<vmem>>, vector<1x32xf32>,
    %c3_80 = arith.constant 3 : index
    %c0_81 = arith.constant 0 : index
    %224 = vector.load %arg4[%c3_80, %c0_81] : memref<6x32xf32, #tpu.memory_space<vmem>>, vector<1x32xf32>
    tpu.vector_store %arg4[%c3_80, %c0_81], %218 {strides = array<i32>} : memref<6x32xf32, #tpu.memory_space<vmem>>, vector<1x32xf32>,
    %c4_82 = arith.constant 4 : index
    %c0_83 = arith.constant 0 : index
    %225 = vector.load %arg4[%c4_82, %c0_83] : memref<6x32xf32, #tpu.memory_space<vmem>>, vector<1x32xf32>
    tpu.vector_store %arg4[%c4_82, %c0_83], %219 {strides = array<i32>} : memref<6x32xf32, #tpu.memory_space<vmem>>, vector<1x32xf32>,
    %c5_84 = arith.constant 5 : index
    %c0_85 = arith.constant 0 : index
    %226 = vector.load %arg4[%c5_84, %c0_85] : memref<6x32xf32, #tpu.memory_space<vmem>>, vector<1x32xf32>
    tpu.vector_store %arg4[%c5_84, %c0_85], %220 {strides = array<i32>} : memref<6x32xf32, #tpu.memory_space<vmem>>, vector<1x32xf32>,
    return
  }
  func.func @transform_0(%arg0: i32) -> (i32, i32) {
    %c0_i32 = arith.constant 0 : i32
    %c0_i32_0 = arith.constant 0 : i32
    %c0_i32_1 = arith.constant 0 : i32
    return %c0_i32, %c0_i32_0 : i32, i32
  }
  func.func @transform_1(%arg0: i32) -> i32 {
    %c0_i32 = arith.constant 0 : i32
    %c0_i32_0 = arith.constant 0 : i32
    return %c0_i32 : i32
  }
  func.func @transform_2(%arg0: i32) -> (i32, i32) {
    %c0_i32 = arith.constant 0 : i32
    %c0_i32_0 = arith.constant 0 : i32
    return %c0_i32, %arg0 : i32, i32
  }
  func.func @transform_3(%arg0: i32) -> (i32, i32) {
    %c0_i32 = arith.constant 0 : i32
    %c0_i32_0 = arith.constant 0 : i32
    return %c0_i32, %arg0 : i32, i32
  }
}

</mosaic_0001>

<bundles_post_ra>
// kernel: tpu_custom_call.1
= control target key start
LH: loop header
LB: loop body
LE: loop exit
PB: predicated region body
PF: predicated region fallthrough
CT: control target
= control target key end

     0   :  { %8 = vsyncpa [#allocation5], 0  ;;  %s707_s0 = inlined_call_operand.hbm [shape: f32[6,6], index: 0, kind: input, shape index: {}]   ;;  %s708_s1 = inlined_call_operand.vmem [shape: f32[6], index: 1, kind: input, shape index: {}]   ;;  %s709_s2 = inlined_call_operand.hbm [shape: f32[6,32], index: 2, kind: input, shape index: {}]   ;;  %s710_s3 = inlined_call_operand.hbm [shape: f32[6,32], index: 3, kind: output, shape index: {}]  }
   0x1   :  { %9 = vsyncpa [#allocation6], 0 }
   0x2   :  { %10 = vsyncpa [#allocation3], 0 }
   0x3   :  { %11 = vsyncpa [#allocation4], 0  ;;  %s26_s14 = sshll.u32 %s708_s1, 4  ;;  %s415_s17 = scalar_lea.hbm %s707_s0, 128  ;;  %s27_s14 = int_to_ptr.vmem [resolvable:$true] %s26_s14 }
   0x4   :  { %p416_p0 = scmp.ne.s32.totalorder %s707_s0, %s415_s17  ;;  %p419_p1 = scmp.lt.u32.totalorder %s415_s17, %s707_s0 }
   0x6   :  { %p421_p2 = pnand %p419_p1, %p416_p0 }
   0x8   :  { %424 = shalt.err (!%p421_p2)
}
   0x9   :  { %s489_s22 = smov [#allocation2]   ;;  %s425_s1 = scalar_lea.vmem %s27_s14, 16 }
   0xa   :  { %19 = dma.hbm_to_smem %s707_s0, 128, %s489_s22, [#allocation5]  }
   0xb   :  { %p426_p3 = scmp.ne.s32.totalorder %s27_s14, %s425_s1  ;;  %p430_p4 = scmp.lt.s32.totalorder %s27_s14, %s27_s14 }
   0xc   :  { %p431_p5 = scmp.lt.s32.totalorder %s425_s1, %s425_s1 }
   0xe   :  { %p432_p6 = por %p431_p5, %p430_p4 }
  0x10   :  { %p433_p7 = pnand %p432_p6, %p426_p3 }
  0x12   :  { %436 = shalt.err (!%p433_p7)
}
  0x13   :  { %s490_s25 = smov [#allocation7]   ;;  %s491_s26 = smov [#allocation8]  }
  0x14   :  { %29 = dma.vmem_to_smem %s27_s14, 16, %s490_s25, [#allocation6]  }
  0x15   :  { %s36_s27 = sshll.u32 %s491_s26, 4  ;;  %s437_s30 = scalar_lea.hbm %s709_s2, 128  ;;  %s37_s27 = int_to_ptr.vmem [resolvable:$true] %s36_s27 }
  0x16   :  { %p438_p8 = scmp.ne.s32.totalorder %s709_s2, %s437_s30  ;;  %p441_p9 = scmp.lt.u32.totalorder %s437_s30, %s709_s2 }
  0x18   :  { %p443_p10 = pnand %p441_p9, %p438_p8 }
  0x1a   :  { %446 = shalt.err (!%p443_p10)
}
  0x1b   :  { %s447_s7 = scalar_lea.vmem %s37_s27, 128  ;;  %p452_p12 = scmp.lt.s32.totalorder %s37_s27, %s37_s27 }
  0x1c   :  { %p448_p11 = scmp.ne.s32.totalorder %s37_s27, %s447_s7  ;;  %p453_p13 = scmp.lt.s32.totalorder %s447_s7, %s447_s7 }
  0x1e   :  { %p454_p0 = por %p453_p13, %p452_p12 }
  0x20   :  { %p455_p1 = pnand %p454_p0, %p448_p11 }
  0x22   :  { %458 = shalt.err (!%p455_p1)
}
  0x23   :  { %39 = dma.hbm_to_vmem [thread:$0]  %s709_s2, 128, %s37_s27, [#allocation3]  }
  0x24   :  { %481 = dma.done.wait [#allocation5], 128  }
  0x25   :  { %482 = vsyncadd [#allocation5], 4294967168 }
  0x26   :  { %483 = dma.done.wait [#allocation6], 16  }
  0x27   :  { %484 = vsyncadd [#allocation6], 4294967280 }
  0x28   :  { %485 = dma.done.wait [#allocation3], 128  }
  0x29   :  { %486 = vsyncadd [#allocation3], 4294967168 }
  0x2a   :  { %49 = sfence }
  0x2b   :  { %s51_s10 = sld [smem:[#allocation2]]  ;;  %s355_s12 = sld [smem:[#allocation2 + $0x1]]  ;;  %v552_v0 = vld [vmem:[#allocation8] sm:$0x3f]  ;;  %vm331_vm0 = vcmask 253952  }
  0x2c   :  { %s54_s11 = sld [smem:[#allocation7]]  ;;  %s356_s13 = sld [smem:[#allocation2 + $0x2]] }
  0x2d   :  { %s357_s14 = sld [smem:[#allocation2 + $0x3]]  ;;  %s358_s15 = sld [smem:[#allocation2 + $0x4]] }
  0x2e   :  { %s540_s16 = sld [smem:[#allocation2 + $0x5]]  ;;  %s542_s17 = sld [smem:[#allocation2 + $0x80]] }
  0x2f   :  { %s544_s18 = sld [smem:[#allocation7 + $0x1]]  ;;  %s548_s19 = sld [smem:[#allocation2 + $0x82]] }
  0x30   :  { %s546_s2 = sld [smem:[#allocation2 + $0x81]]  ;;  %s550_s20 = sld [smem:[#allocation2 + $0x83]] }
  0x31   :  { %v52_v1 = vstv %s51_s10  ;;  %s554_s21 = sld [smem:[#allocation2 + $0x84]]  ;;  %s556_s22 = sld [smem:[#allocation2 + $0x85]]  ;;  %v58_v4 = vstv %s355_s12 }
  0x32   :  { %v55_v2 = vstv %s54_s11  ;;  %v53_v3 = vmul.f32 %v52_v1, %v552_v0  ;;  %v65_v5 = vstv %s356_s13  ;;  %v59_v6 = vmul.f32 %v58_v4, %v552_v0  ;;  %s561_s23 = sld [smem:[#allocation2 + $0x100]]  ;;  %s563_s24 = sld [smem:[#allocation7 + $0x2]] }
  0x33   :  { %v66_v7 = vmul.f32 %v65_v5, %v552_v0  ;;  %v72_v8 = vstv %s357_s14  ;;  %v79_v9 = vstv %s358_s15  ;;  %s568_s1 = sld [smem:[#allocation2 + $0x101]]  ;;  %s571_s25 = sld [smem:[#allocation2 + $0x102]] }
  0x34   :  { %v56_v10 = vadd.f32 %v55_v2, %v53_v3  ;;  %v73_v11 = vmul.f32 %v72_v8, %v552_v0  ;;  %v80_v12 = vmul.f32 %v79_v9, %v552_v0  ;;  %v86_v13 = vstv %s540_s16  ;;  %s573_s26 = sld [smem:[#allocation2 + $0x103]]  ;;  %s580_s27 = sld [smem:[#allocation2 + $0x104]] }
  0x35   :  { %v61_v14 = vrot.slane %v59_v6, 1  ;;  %v68_v15 = vrot.slane %v66_v7, 2  ;;  %v93_v16 = vstv %s542_s17  ;;  %v87_v18 = vmul.f32 %v86_v13, %v552_v0  ;;  %s582_s28 = sld [smem:[#allocation2 + $0x105]]  ;;  %s590_s29 = sld [smem:[#allocation2 + $0x180]] }
  0x36   :  { %v75_v17 = vrot.slane %v73_v11, 3  ;;  %v94_v19 = vmul.f32 %v93_v16, %v552_v0  ;;  %v96_v20 = vstv %s544_s18  ;;  %v82_v22 = vrot.slane %v80_v12, 4  ;;  %s592_s30 = sld [smem:[#allocation7 + $0x3]]  ;;  %s595_s4 = sld [smem:[#allocation2 + $0x181]] }
  0x37   :  { %v63_v21 = vadd.f32 %v61_v14, %v56_v10  ;;  %v99_v23 = vstv %s546_s2  ;;  %v106_v24 = vstv %s548_s19  ;;  %v113_v28 = vstv %s550_s20  ;;  %s600_s5 = sld [smem:[#allocation2 + $0x182]]  ;;  %s602_s0 = sld [smem:[#allocation2 + $0x183]] }
  0x38   :  { %v97_v25 = vadd.f32 %v96_v20, %v94_v19  ;;  %v100_v26 = vmul.f32 %v99_v23, %v552_v0  ;;  %v107_v27 = vmul.f32 %v106_v24, %v552_v0  ;;  %v114_v30 = vmul.f32 %v113_v28, %v552_v0  ;;  %s608_s6 = sld [smem:[#allocation2 + $0x184]]  ;;  %s610_s7 = sld [smem:[#allocation2 + $0x185]] }
  0x39   :  { %v70_v29 = vadd.f32 %v68_v15, %v63_v21  ;;  %v120_v31 = vstv %s554_s21  ;;  %v127_v32 = vstv %s556_s22  ;;  %v89_v33 = vrot.slane %v87_v18, 5  ;;  %s617_s8 = sld [smem:[#allocation2 + $0x200]]  ;;  %s622_s9 = sld [smem:[#allocation7 + $0x4]] }
  0x3a   :  { %v102_v34 = vrot.slane %v100_v26, 1  ;;  %v109_v35 = vrot.slane %v107_v27, 2  ;;  %v121_v36 = vmul.f32 %v120_v31, %v552_v0  ;;  %v128_v38 = vmul.f32 %v127_v32, %v552_v0  ;;  %s628_s10 = sld [smem:[#allocation2 + $0x201]]  ;;  %s633_s11 = sld [smem:[#allocation2 + $0x202]] }
  0x3b   :  { %v77_v37 = vadd.f32 %v75_v17, %v70_v29  ;;  %v134_v39 = vstv %s561_s23  ;;  %v137_v40 = vstv %s563_s24  ;;  %v116_v42 = vrot.slane %v114_v30, 3  ;;  %s635_s12 = sld [smem:[#allocation2 + $0x203]]  ;;  %s642_s13 = sld [smem:[#allocation2 + $0x204]] }
  0x3c   :  { %v104_v41 = vadd.f32 %v102_v34, %v97_v25  ;;  %v123_v43 = vrot.slane %v121_v36, 4  ;;  %v135_v44 = vmul.f32 %v134_v39, %v552_v0  ;;  %v140_v46 = vstv %s568_s1  ;;  %s644_s14 = sld [smem:[#allocation2 + $0x205]]  ;;  %s650_s15 = sld [smem:[#allocation2 + $0x280]] }
  0x3d   :  { %v84_v45 = vadd.f32 %v82_v22, %v77_v37  ;;  %v147_v47 = vstv %s571_s25  ;;  %v154_v48 = vstv %s573_s26  ;;  %v141_v51 = vmul.f32 %v140_v46, %v552_v0  ;;  %s652_s16 = sld [smem:[#allocation7 + $0x5]]  ;;  %s654_s17 = sld [smem:[#allocation2 + $0x281]] }
  0x3e   :  { %v111_v49 = vadd.f32 %v109_v35, %v104_v41  ;;  %v138_v50 = vadd.f32 %v137_v40, %v135_v44  ;;  %v148_v52 = vmul.f32 %v147_v47, %v552_v0  ;;  %v130_v53 = vrot.slane %v128_v38, 5  ;;  %s658_s18 = sld [smem:[#allocation2 + $0x282]]  ;;  %s660_s2 = sld [smem:[#allocation2 + $0x283]] }
  0x3f   :  { %v155_v54 = vmul.f32 %v154_v48, %v552_v0  ;;  %v161_v55 = vstv %s580_s27  ;;  %v168_v56 = vstv %s582_s28  ;;  %v143_v58 = vrot.slane %v141_v51, 1  ;;  %s665_s19 = sld [smem:[#allocation2 + $0x284]]  ;;  %s667_s20 = sld [smem:[#allocation2 + $0x285]] }
  0x40   :  { %v118_v57 = vadd.f32 %v116_v42, %v111_v49  ;;  %v150_v59 = vrot.slane %v148_v52, 2  ;;  %v162_v60 = vmul.f32 %v161_v55, %v552_v0  ;;  %v91_v61 = vadd.f32 %v89_v33, %v84_v45  ;;  %s492_s21 = smov [#allocation9]  }
  0x41   :  { %v157_v62 = vrot.slane %v155_v54, 3  ;;  %v175_v63 = vstv %s590_s29  ;;  %v178_v1 = vstv %s592_s30  ;;  %v145_v3 = vadd.f32 %v143_v58, %v138_v50  ;;  %s344_s22 = sshll.u32 %s492_s21, 4  ;;  %s345_s22 = int_to_ptr.vmem [resolvable:$true] %s344_s22 }
  0x42   :  { %v125_v2 = vadd.f32 %v123_v43, %v118_v57  ;;  %v625_v4 = vmul.f32 %v168_v56, %v552_v0  ;;  %v176_v5 = vmul.f32 %v175_v63, %v552_v0  ;;  %v164_v6 = vrot.slane %v162_v60, 4  ;;  %s459_s23 = scalar_lea.vmem %s345_s22, 128  ;;  %p464_p3 = scmp.lt.s32.totalorder %s345_s22, %s345_s22 }
  0x43   :  { %v181_v7 = vstv %s595_s4  ;;  %v188_v8 = vstv %s600_s5  ;;  %v195_v9 = vstv %s602_s0  ;;  %v152_v11 = vadd.f32 %v150_v59, %v145_v3  ;;  %p460_p2 = scmp.ne.s32.totalorder %s345_s22, %s459_s23  ;;  %p465_p4 = scmp.lt.s32.totalorder %s459_s23, %s459_s23 }
  0x44   :  { %v132_v10 = vadd.f32 %v130_v53, %v125_v2  ;;  %v179_v12 = vadd.f32 %v178_v1, %v176_v5  ;;  %v182_v13 = vmul.f32 %v181_v7, %v552_v0  ;;  %v189_v14 = vmul.f32 %v188_v8, %v552_v0 }
  0x45   :  { %v196_v15 = vmul.f32 %v195_v9, %v552_v0  ;;  %v202_v16 = vstv %s608_s6  ;;  %v209_v17 = vstv %s610_s7  ;;  %v159_v19 = vadd.f32 %v157_v62, %v152_v11  ;;  %p466_p5 = por %p465_p4, %p464_p3 }
  0x46   :  { %v297_v18 = vmax.f32 %v91_v61, %v132_v10  ;;  %v184_v20 = vrot.slane %v182_v13, 1  ;;  %v203_v21 = vmul.f32 %v202_v16, %v552_v0  ;;  %v171_v22 = vrot.slane %v625_v4, 5 }
  0x47   :  { %v191_v23 = vrot.slane %v189_v14, 2  ;;  %v210_v24 = vmul.f32 %v209_v17, %v552_v0  ;;  %v216_v25 = vstv %s617_s8  ;;  %v198_v29 = vrot.slane %v196_v15, 3  ;;  %p467_p6 = pnand %p466_p5, %p460_p2 }
  0x48   :  { %v298_v26 = vsub.f32 %v91_v61, %v297_v18  ;;  %v301_v27 = vsub.f32 %v132_v10, %v297_v18  ;;  %v186_v28 = vadd.f32 %v184_v20, %v179_v12  ;;  %v166_v30 = vadd.f32 %v164_v6, %v159_v19 }
  0x49   :  { %v205_v31 = vrot.slane %v203_v21, 4  ;;  %v217_v32 = vmul.f32 %v216_v25, %v552_v0  ;;  %v219_v33 = vstv %s622_s9  ;;  %v212_v37 = vrot.slane %v210_v24, 5 }
  0x4a   :  { %v299_v34 = vmul.f32 1.442695, %v298_v26  ;;  %v302_v35 = vmul.f32 1.442695, %v301_v27  ;;  %v193_v36 = vadd.f32 %v191_v23, %v186_v28  ;;  %v222_v39 = vstv %s628_s10 }
  0x4b   :  { %v220_v38 = vadd.f32 %v219_v33, %v217_v32  ;;  %v229_v40 = vstv %s633_s11  ;;  %v236_v41 = vstv %s635_s12  ;;  %v223_v43 = vmul.f32 %v222_v39, %v552_v0 }
  0x4c   :  { %399 = vpow2.f32 %v299_v34  ;;  %v200_v42 = vadd.f32 %v198_v29, %v193_v36  ;;  %v230_v44 = vmul.f32 %v229_v40, %v552_v0  ;;  %v237_v45 = vmul.f32 %v236_v41, %v552_v0 }
  0x4d   :  { %401 = vpow2.f32 %v302_v35  ;;  %v243_v46 = vstv %s642_s13  ;;  %v250_v47 = vstv %s644_s14  ;;  %v225_v49 = vrot.slane %v223_v43, 1 }
  0x4e   :  { %v207_v48 = vadd.f32 %v205_v31, %v200_v42  ;;  %v232_v50 = vrot.slane %v230_v44, 2  ;;  %v244_v51 = vmul.f32 %v243_v46, %v552_v0  ;;  %v173_v52 = vadd.f32 %v171_v22, %v166_v30 }
  0x4f   :  { %v251_v53 = vmul.f32 %v250_v47, %v552_v0  ;;  %v257_v54 = vstv %s650_s15  ;;  %v260_v55 = vstv %s652_s16  ;;  %v227_v57 = vadd.f32 %v225_v49, %v220_v38 }
  0x50   :  { %v214_v56 = vadd.f32 %v212_v37, %v207_v48  ;;  %v239_v58 = vrot.slane %v237_v45, 3  ;;  %v258_v59 = vmul.f32 %v257_v54, %v552_v0  ;;  %v246_v60 = vrot.slane %v244_v51, 4 }
  0x51   :  { %v263_v61 = vstv %s654_s17  ;;  %v270_v62 = vstv %s658_s18  ;;  %v277_v63 = vstv %s660_s2  ;;  %v234_v1 = vadd.f32 %v232_v50, %v227_v57 }
  0x52   :  { %v261_v2 = vadd.f32 %v260_v55, %v258_v59  ;;  %v264_v3 = vmul.f32 %v263_v61, %v552_v0  ;;  %v271_v4 = vmul.f32 %v270_v62, %v552_v0  ;;  %v253_v5 = vrot.slane %v251_v53, 5 }
  0x53   :  { %v278_v6 = vmul.f32 %v277_v63, %v552_v0  ;;  %v284_v7 = vstv %s665_s19  ;;  %v291_v8 = vstv %s667_s20  ;;  %v241_v9 = vadd.f32 %v239_v58, %v234_v1 }
  0x54   :  { %v266_v10 = vrot.slane %v264_v3, 1  ;;  %v273_v11 = vrot.slane %v271_v4, 2  ;;  %v285_v12 = vmul.f32 %v284_v7, %v552_v0  ;;  %v292_v17 = vmul.f32 %v291_v8, %v552_v0 }
  0x55   :  { %v248_v14 = vadd.f32 %v246_v60, %v241_v9  ;;  %v280_v16 = vrot.slane %v278_v6, 3  ;;  %v308_v19 = vmax.f32 %v173_v52, %v214_v56 }
  0x56   :  { %v400_v13 = vpop.eup %399  ;;  %v268_v15 = vadd.f32 %v266_v10, %v261_v2  ;;  %v287_v23 = vrot.slane %v285_v12, 4  ;;  %v294_v25 = vrot.slane %v292_v17, 5 }
  0x57   :  { %v402_v18 = vpop.eup %401  ;;  %v255_v21 = vadd.f32 %v253_v5, %v248_v14 }
  0x58   :  { %v304_v20 = vadd.f32 %v402_v18, %v400_v13  ;;  %v275_v22 = vadd.f32 %v273_v11, %v268_v15 }
  0x59   :  { %v309_v27 = vmax.f32 %v308_v19, %v255_v21 }
  0x5a   :  { %403 = vrcp.f32 %v304_v20  ;;  %v282_v24 = vadd.f32 %v280_v16, %v275_v22 }
  0x5c   :  { %v289_v26 = vadd.f32 %v287_v23, %v282_v24 }
  0x5e   :  { %v296_v28 = vadd.f32 %v294_v25, %v289_v26 }
  0x60   :  { %v310_v29 = vmax.f32 %v309_v27, %v296_v28 }
  0x62   :  { %v311_v30 = vsub.f32 %v173_v52, %v310_v29  ;;  %v314_v31 = vsub.f32 %v214_v56, %v310_v29  ;;  %v317_v32 = vsub.f32 %v255_v21, %v310_v29  ;;  %v320_v33 = vsub.f32 %v296_v28, %v310_v29 }
  0x64   :  { %v404_v34 = vpop.eup %403  ;;  %v312_v0 = vmul.f32 1.442695, %v311_v30  ;;  %v315_v35 = vmul.f32 1.442695, %v314_v31  ;;  %v318_v36 = vmul.f32 1.442695, %v317_v32 }
  0x65   :  { %v306_v37 = vmul.f32 %v404_v34, %v400_v13  ;;  %v307_v38 = vmul.f32 %v404_v34, %v402_v18  ;;  %v321_v39 = vmul.f32 1.442695, %v320_v33 }
  0x66   :  { %405 = vpow2.f32 %v312_v0 }
  0x67   :  { %332 = vst.msk [vmem:[#allocation9] sm:$0x1] %vm331_vm0, %v306_v37  ;;  %333 = vst.msk [vmem:[#allocation9 + $0x1] sm:$0x1] %vm331_vm0, %v307_v38  ;;  %407 = vpow2.f32 %v315_v35 }
  0x68   :  { %409 = vpow2.f32 %v318_v36 }
  0x69   :  { %411 = vpow2.f32 %v321_v39 }
  0x70   :  { %v406_v40 = vpop.eup %405 }
  0x71   :  { %v408_v41 = vpop.eup %407 }
  0x72   :  { %v410_v42 = vpop.eup %409  ;;  %v323_v43 = vadd.f32 %v408_v41, %v406_v40 }
  0x73   :  { %v412_v44 = vpop.eup %411 }
  0x74   :  { %v324_v45 = vadd.f32 %v410_v42, %v323_v43 }
  0x76   :  { %v325_v46 = vadd.f32 %v412_v44, %v324_v45 }
  0x78   :  { %413 = vrcp.f32 %v325_v46 }
  0x82   :  { %v414_v47 = vpop.eup %413 }
  0x83   :  { %v327_v48 = vmul.f32 %v414_v47, %v406_v40  ;;  %v328_v49 = vmul.f32 %v414_v47, %v408_v41  ;;  %v329_v50 = vmul.f32 %v414_v47, %v410_v42  ;;  %v330_v51 = vmul.f32 %v414_v47, %v412_v44 }
  0x85   :  { %334 = vst.msk [vmem:[#allocation9 + $0x2] sm:$0x1] %vm331_vm0, %v327_v48  ;;  %335 = vst.msk [vmem:[#allocation9 + $0x3] sm:$0x1] %vm331_vm0, %v328_v49 }
  0x86   :  { %336 = vst.msk [vmem:[#allocation9 + $0x4] sm:$0x1] %vm331_vm0, %v329_v50  ;;  %337 = vst.msk [vmem:[#allocation9 + $0x5] sm:$0x1] %vm331_vm0, %v330_v51 }
  0x87   :  { %470 = shalt.err (!%p467_p6)
}
  0x88   :  { %s471_s25 = scalar_lea.hbm %s710_s3, 128 }
  0x89   :  { %p472_p7 = scmp.ne.s32.totalorder %s710_s3, %s471_s25  ;;  %p475_p8 = scmp.lt.u32.totalorder %s471_s25, %s710_s3 }
  0x8b   :  { %p477_p9 = pnand %p475_p8, %p472_p7 }
  0x8d   :  { %480 = shalt.err (!%p477_p9)
}
  0x8e   :  { %347 = dma.vmem_to_hbm [thread:$0]  %s345_s22, 128, %s710_s3, [#allocation4]  }
  0x8f   :  { %487 = dma.done.wait [#allocation4], 128  }
  0x90   :  { %488 = vsyncadd [#allocation4], 4294967168 }
  0x91   :  { %351 = vsyncpa [#allocation3], 1 }
  0x92   :  { %352 = vsyncpa [#allocation4], 1 }
  0x93   :  { %353 = vsyncpa [#allocation5], 1 }
  0x94   :  { %354 = vsyncpa [#allocation6], 1 }

</bundles_post_ra>
